<compile_context>
chip_gen: v7x
topology: tpu7x:2x2x1
jax: 0.10.0
libtpu: 0.0.40
codegen_flags: <defaults>
</compile_context>

<pallas_src>
import functools

import jax
import jax.numpy as jnp
from jax.experimental import pallas as pl
from jax.experimental.pallas import tpu as pltpu

_LANES = 128


# ----------------------------------------------------------------------------------
# fused kernel: global-avg-pool + fc1(ReLU) + fc2(ReLU) + fc3  (single (bt, 2C) output)
# ----------------------------------------------------------------------------------
def _window_mlp_kernel(x_ref, p_ref, out_ref, *, C, hw, h1):
    # static row offsets into the packed parameter slab
    w1_r, w2_r, w3_r = 0, C, C + h1
    b_r = C + 2 * h1  # rows b_r, b_r+1, b_r+2 hold b1, b2, b3

    # cast per-tile in VMEM (no wrapper-side HBM cast pass)
    xf = x_ref[...].astype(jnp.float32)                                   # (bt, C*hw)

    # global average pool: mean over each static hw-lane segment -> (bt, C)
    pooled = jnp.concatenate(
        [jnp.mean(xf[:, c * hw:(c + 1) * hw], axis=-1, keepdims=True)
         for c in range(C)],
        axis=-1)

    # static slices of the resident parameter slab
    w1 = p_ref[w1_r:w1_r + C,  0:h1]
    w2 = p_ref[w2_r:w2_r + h1, 0:h1]
    w3 = p_ref[w3_r:w3_r + h1, 0:2 * C]
    b1 = p_ref[b_r:b_r + 1,     0:h1]
    b2 = p_ref[b_r + 1:b_r + 2, 0:h1]
    b3 = p_ref[b_r + 2:b_r + 3, 0:2 * C]

    h = jnp.maximum(jnp.dot(pooled, w1, preferred_element_type=jnp.float32) + b1, 0.0)
    h = jnp.maximum(jnp.dot(h,      w2, preferred_element_type=jnp.float32) + b2, 0.0)
    out_ref[...] = jnp.dot(h, w3, preferred_element_type=jnp.float32) + b3


# ----------------------------------------------------------------------------------
# parameter packing: one 128-lane-padded f32 slab
#   rows [0:C]         -> w1 (C,  h1)
#   rows [C:C+h1]      -> w2 (h1, h1)
#   rows [C+h1:C+2h1]  -> w3 (h1, 2C)
#   rows [C+2h1 .. +2] -> b1, b2, b3
# ----------------------------------------------------------------------------------
def _pack_params(params, C):
    h1 = params["w1"].shape[1]
    rows = C + 2 * h1 + 3
    rows_pad = -(-rows // 8) * 8
    slab = jnp.zeros((rows_pad, _LANES), jnp.float32)
    slab = slab.at[0:C, 0:h1].set(params["w1"].astype(jnp.float32))
    slab = slab.at[C:C + h1, 0:h1].set(params["w2"].astype(jnp.float32))
    slab = slab.at[C + h1:C + 2 * h1, 0:2 * C].set(params["w3"].astype(jnp.float32))
    b_r = C + 2 * h1
    slab = slab.at[b_r,     0:h1].set(params["b1"].reshape(-1).astype(jnp.float32))
    slab = slab.at[b_r + 1, 0:h1].set(params["b2"].reshape(-1).astype(jnp.float32))
    slab = slab.at[b_r + 2, 0:2 * C].set(params["b3"].reshape(-1).astype(jnp.float32))
    return slab


# ----------------------------------------------------------------------------------
# wrapper
# ----------------------------------------------------------------------------------
def window_prediction_forward(x_nchw, params, *, batch_tile=1024):
    """Forward pass of WindowPredictionModel.

    x_nchw: (N, C, H, W) input (any float dtype; cast to f32 in-kernel).
    returns (window_width, window_level), each of shape (N, C) float32.
    """
    N, C, H, W = x_nchw.shape
    hw = H * W
    h1 = params["w1"].shape[1]

    # lane-dense, fully-packed view; contiguous re-view => no data movement, no cast
    x = x_nchw.reshape(N, C * hw)

    if N <= batch_tile:
        bt = N                                  # single block == full batch dim
    else:
        bt = max(8, (batch_tile // 8) * 8)      # sublane-aligned tile
    grid = (pl.cdiv(N, bt),)

    p_slab = _pack_params(params, C)

    kernel = functools.partial(_window_mlp_kernel, C=C, hw=hw, h1=h1)

    # input double-buffer dominates VMEM; set limit with headroom (<= 96 MiB, and
    # at bt=1024/f32 this is ~10 MiB so it stays far below v7x's 64 MiB physical)
    needed = (2 * bt * C * hw * x.dtype.itemsize          # streamed input (x2 buffers)
              + 2 * bt * 2 * C * 4                        # streamed output (x2 buffers)
              + 2 * p_slab.size * 4                       # resident params
              + (2 << 20))                                 # slack
    vmem_limit = int(min(max(needed, 32 << 20), 96 << 20))

    out = pl.pallas_call(
        kernel,
        out_shape=jax.ShapeDtypeStruct((N, 2 * C), jnp.float32),
        grid=grid,
        in_specs=[
            pl.BlockSpec((bt, C * hw), lambda i: (i, 0)),     # streamed batch slab
            pl.BlockSpec(p_slab.shape, lambda i: (0, 0)),     # resident param slab
        ],
        out_specs=pl.BlockSpec((bt, 2 * C), lambda i: (i, 0)),
        compiler_params=pltpu.CompilerParams(
            dimension_semantics=("parallel",),                # megacore sharding (v7x)
            vmem_limit_bytes=vmem_limit),
    )(x, p_slab)

    return out[:, :C], out[:, C:]


# ----------------------------------------------------------------------------------
# deterministic synthetic parameters (PyTorch nn.Linear-style init, stored as (in, out))
# ----------------------------------------------------------------------------------
def init_params(key, in_ch):
    h1 = 4 * in_ch
    out = 2 * in_ch
    ks = jax.random.split(key, 6)

    def lin(kw, kb, fan_in, fan_out):
        bound = fan_in ** -0.5
        w = jax.random.uniform(kw, (fan_in, fan_out), jnp.float32, -bound, bound)
        b = jax.random.uniform(kb, (fan_out,), jnp.float32, -bound, bound)
        return w, b

    w1, b1 = lin(ks[0], ks[1], in_ch, h1)
    w2, b2 = lin(ks[2], ks[3], h1, h1)
    w3, b3 = lin(ks[4], ks[5], h1, out)
    return {"w1": w1, "b1": b1, "w2": w2, "b2": b2, "w3": w3, "b3": b3}


# ----------------------------------------------------------------------------------
# pure-JAX reference for correctness check
# ----------------------------------------------------------------------------------
def reference_forward(x_nchw, p):
    C = x_nchw.shape[1]
    pooled = jnp.mean(x_nchw.astype(jnp.float32), axis=(2, 3))       # (N, C)
    h = jax.nn.relu(pooled @ p["w1"] + p["b1"])
    h = jax.nn.relu(h @ p["w2"] + p["b2"])
    y = h @ p["w3"] + p["b3"]
    return y[:, :C], y[:, C:]


# ----------------------------------------------------------------------------------
if __name__ == "__main__":
    key = jax.random.PRNGKey(0)
    kx, kx2, kp = jax.random.split(key, 3)

    # --- test 1: small f32 input, single block (N == bt) ---
    N, C, H, W = 2, 4, 16, 16
    x = jax.random.normal(kx, (N, C, H, W), jnp.float32)
    params = init_params(kp, C)

    ww, wl = window_prediction_forward(x, params)
    ww, wl = jax.block_until_ready((ww, wl))
    assert ww.shape == (N, C) and wl.shape == (N, C)
    assert bool(jnp.all(jnp.isfinite(ww))) and bool(jnp.all(jnp.isfinite(wl)))
    ww_ref, wl_ref = reference_forward(x, params)
    assert bool(jnp.allclose(ww, ww_ref, atol=1e-5, rtol=1e-5)), "window_width mismatch"
    assert bool(jnp.allclose(wl, wl_ref, atol=1e-5, rtol=1e-5)), "window_level mismatch"

    # --- test 2: bf16 input, N not a multiple of batch_tile (partial last block) ---
    N2 = 20
    x2 = jax.random.normal(kx2, (N2, C, H, W), jnp.float32)
    x2_bf16 = x2.astype(jnp.bfloat16)
    ww2, wl2 = window_prediction_forward(x2_bf16, params, batch_tile=8)
    ww2, wl2 = jax.block_until_ready((ww2, wl2))
    assert ww2.shape == (N2, C) and wl2.shape == (N2, C)
    ww2_ref, wl2_ref = reference_forward(x2_bf16, params)
    assert bool(jnp.allclose(ww2, ww2_ref, atol=1e-4, rtol=1e-4)), "bf16 width mismatch"
    assert bool(jnp.allclose(wl2, wl2_ref, atol=1e-4, rtol=1e-4)), "bf16 level mismatch"

    print("KERNEL_OK")
</pallas_src>

<mosaic_0001>
module attributes {stable_mosaic.version = 11 : i64} {
  func.func @_window_mlp_kernel(%arg0: i32, %arg1: memref<2x1024xf32, #tpu.memory_space<vmem>>, %arg2: memref<40x128xf32, #tpu.memory_space<vmem>>, %arg3: memref<2x8xf32, #tpu.memory_space<vmem>>) attributes {dimension_semantics = [#tpu.dimension_semantics<parallel>], iteration_bounds = array<i64: 1>, scalar_prefetch = 0 : i64, scratch_operands = 0 : i64, tpu.core_type = #tpu.core_type<tc>, window_params = [{transform_indices = @transform_0, window_bounds = array<i64: 2, 1024>}, {pipeline_mode = #tpu.pipeline_mode<synchronous>, transform_indices = @transform_1, window_bounds = array<i64: 40, 128>}, {transform_indices = @transform_2, window_bounds = array<i64: 2, 8>}]} {
    %c0 = arith.constant 0 : index
    %c0_0 = arith.constant 0 : index
    %0 = vector.load %arg1[%c0, %c0_0] : memref<2x1024xf32, #tpu.memory_space<vmem>>, vector<2x1024xf32>
    %1 = vector.extract_strided_slice %0 {offsets = [0, 0], sizes = [2, 256], strides = [1, 1]} : vector<2x1024xf32> to vector<2x256xf32>
    %cst = arith.constant dense<0.000000e+00> : vector<2xf32>
    %2 = vector.multi_reduction <add>, %1, %cst [1] : vector<2x256xf32> to vector<2xf32>
    %3 = vector.shape_cast %2 : vector<2xf32> to vector<2x1xf32>
    %cst_1 = arith.constant 2.560000e+02 : f32
    %4 = vector.broadcast %cst_1 : f32 to vector<2x1xf32>
    %5 = arith.divf %3, %4 : vector<2x1xf32>
    %6 = vector.extract_strided_slice %0 {offsets = [0, 256], sizes = [2, 256], strides = [1, 1]} : vector<2x1024xf32> to vector<2x256xf32>
    %cst_2 = arith.constant dense<0.000000e+00> : vector<2xf32>
    %7 = vector.multi_reduction <add>, %6, %cst_2 [1] : vector<2x256xf32> to vector<2xf32>
    %8 = vector.shape_cast %7 : vector<2xf32> to vector<2x1xf32>
    %cst_3 = arith.constant 2.560000e+02 : f32
    %9 = vector.broadcast %cst_3 : f32 to vector<2x1xf32>
    %10 = arith.divf %8, %9 : vector<2x1xf32>
    %11 = vector.extract_strided_slice %0 {offsets = [0, 512], sizes = [2, 256], strides = [1, 1]} : vector<2x1024xf32> to vector<2x256xf32>
    %cst_4 = arith.constant dense<0.000000e+00> : vector<2xf32>
    %12 = vector.multi_reduction <add>, %11, %cst_4 [1] : vector<2x256xf32> to vector<2xf32>
    %13 = vector.shape_cast %12 : vector<2xf32> to vector<2x1xf32>
    %cst_5 = arith.constant 2.560000e+02 : f32
    %14 = vector.broadcast %cst_5 : f32 to vector<2x1xf32>
    %15 = arith.divf %13, %14 : vector<2x1xf32>
    %16 = vector.extract_strided_slice %0 {offsets = [0, 768], sizes = [2, 256], strides = [1, 1]} : vector<2x1024xf32> to vector<2x256xf32>
    %cst_6 = arith.constant dense<0.000000e+00> : vector<2xf32>
    %17 = vector.multi_reduction <add>, %16, %cst_6 [1] : vector<2x256xf32> to vector<2xf32>
    %18 = vector.shape_cast %17 : vector<2xf32> to vector<2x1xf32>
    %cst_7 = arith.constant 2.560000e+02 : f32
    %19 = vector.broadcast %cst_7 : f32 to vector<2x1xf32>
    %20 = arith.divf %18, %19 : vector<2x1xf32>
    %21 = tpu.concatenate %5, %10, %15, %20 in 1 : vector<2x1xf32>, vector<2x1xf32>, vector<2x1xf32>, vector<2x1xf32> -> vector<2x4xf32>
    %c0_8 = arith.constant 0 : index
    %c0_9 = arith.constant 0 : index
    %22 = vector.load %arg2[%c0_8, %c0_9] : memref<40x128xf32, #tpu.memory_space<vmem>>, vector<4x16xf32>
    %c4 = arith.constant 4 : index
    %c0_10 = arith.constant 0 : index
    %23 = vector.load %arg2[%c4, %c0_10] : memref<40x128xf32, #tpu.memory_space<vmem>>, vector<16x16xf32>
    %c20 = arith.constant 20 : index
    %c0_11 = arith.constant 0 : index
    %24 = vector.load %arg2[%c20, %c0_11] : memref<40x128xf32, #tpu.memory_space<vmem>>, vector<16x8xf32>
    %c36 = arith.constant 36 : index
    %c0_12 = arith.constant 0 : index
    %25 = vector.load %arg2[%c36, %c0_12] : memref<40x128xf32, #tpu.memory_space<vmem>>, vector<1x16xf32>
    %c37 = arith.constant 37 : index
    %c0_13 = arith.constant 0 : index
    %26 = vector.load %arg2[%c37, %c0_13] : memref<40x128xf32, #tpu.memory_space<vmem>>, vector<1x16xf32>
    %c38 = arith.constant 38 : index
    %c0_14 = arith.constant 0 : index
    %27 = vector.load %arg2[%c38, %c0_14] : memref<40x128xf32, #tpu.memory_space<vmem>>, vector<1x8xf32>
    %cst_15 = arith.constant dense<0.000000e+00> : vector<2x16xf32>
    %28 = tpu.matmul %21, %22, %cst_15 {dimension_numbers = #tpu.dot_dimension_numbers<[1], [0], [0], [1], [0, 0, 1, 1], [], []>} : vector<2x4xf32>, vector<4x16xf32>, vector<2x16xf32> -> vector<2x16xf32>
    %29 = vector.broadcast %25 : vector<1x16xf32> to vector<2x16xf32>
    %30 = arith.addf %28, %29 : vector<2x16xf32>
    %cst_16 = arith.constant 0.000000e+00 : f32
    %31 = vector.broadcast %cst_16 : f32 to vector<2x16xf32>
    %32 = arith.maximumf %30, %31 : vector<2x16xf32>
    %cst_17 = arith.constant dense<0.000000e+00> : vector<2x16xf32>
    %33 = tpu.matmul %32, %23, %cst_17 {dimension_numbers = #tpu.dot_dimension_numbers<[1], [0], [0], [1], [0, 0, 1, 1], [], []>} : vector<2x16xf32>, vector<16x16xf32>, vector<2x16xf32> -> vector<2x16xf32>
    %34 = vector.broadcast %26 : vector<1x16xf32> to vector<2x16xf32>
    %35 = arith.addf %33, %34 : vector<2x16xf32>
    %cst_18 = arith.constant 0.000000e+00 : f32
    %36 = vector.broadcast %cst_18 : f32 to vector<2x16xf32>
    %37 = arith.maximumf %35, %36 : vector<2x16xf32>
    %cst_19 = arith.constant dense<0.000000e+00> : vector<2x8xf32>
    %38 = tpu.matmul %37, %24, %cst_19 {dimension_numbers = #tpu.dot_dimension_numbers<[1], [0], [0], [1], [0, 0, 1, 1], [], []>} : vector<2x16xf32>, vector<16x8xf32>, vector<2x8xf32> -> vector<2x8xf32>
    %39 = vector.broadcast %27 : vector<1x8xf32> to vector<2x8xf32>
    %40 = arith.addf %38, %39 : vector<2x8xf32>
    %c0_20 = arith.constant 0 : index
    %c0_21 = arith.constant 0 : index
    %41 = vector.load %arg3[%c0_20, %c0_21] : memref<2x8xf32, #tpu.memory_space<vmem>>, vector<2x8xf32>
    tpu.vector_store %arg3[%c0_20, %c0_21], %40 {strides = array<i32>} : memref<2x8xf32, #tpu.memory_space<vmem>>, vector<2x8xf32>,
    return
  }
  func.func @transform_0(%arg0: i32) -> (i32, i32) {
    %c0_i32 = arith.constant 0 : i32
    %c0_i32_0 = arith.constant 0 : i32
    return %arg0, %c0_i32 : i32, i32
  }
  func.func @transform_1(%arg0: i32) -> (i32, i32) {
    %c0_i32 = arith.constant 0 : i32
    %c0_i32_0 = arith.constant 0 : i32
    %c0_i32_1 = arith.constant 0 : i32
    return %c0_i32, %c0_i32_0 : i32, i32
  }
  func.func @transform_2(%arg0: i32) -> (i32, i32) {
    %c0_i32 = arith.constant 0 : i32
    %c0_i32_0 = arith.constant 0 : i32
    return %arg0, %c0_i32 : i32, i32
  }
}

</mosaic_0001>

<bundles_post_ra>
// kernel: tpu_custom_call.1
= control target key start
LH: loop header
LB: loop body
LE: loop exit
PB: predicated region body
PF: predicated region fallthrough
CT: control target
= control target key end

     0   :  { %7 = vsyncpa [#allocation3], 0  ;;  %s582_s0 = inlined_call_operand.hbm [shape: f32[2,1024], index: 0, kind: input, shape index: {}]   ;;  %s583_s1 = inlined_call_operand.hbm [shape: f32[40,128], index: 1, kind: input, shape index: {}]   ;;  %s584_s2 = inlined_call_operand.hbm [shape: f32[2,8], index: 2, kind: output, shape index: {}]  }
   0x1   :  { %8 = vsyncpa [#allocation6], 0 }
   0x2   :  { %9 = vsyncpa [#allocation4], 0  ;;  %s504_s9 = smov [#allocation2]   ;;  %s505_s11 = smov [#allocation5]  }
   0x3   :  { %s16_s10 = sshll.u32 %s504_s9, 4  ;;  %s25_s12 = sshll.u32 %s505_s11, 4  ;;  %s17_s10 = int_to_ptr.vmem [resolvable:$true] %s16_s10  ;;  %s528_s12 = int_to_ptr.vmem [resolvable:$true] %s25_s12 }
   0x4   :  { %s432_s15 = scalar_lea.hbm %s582_s0, 256 }
   0x5   :  { %p433_p0 = scmp.ne.s32.totalorder %s582_s0, %s432_s15  ;;  %p436_p1 = scmp.lt.u32.totalorder %s432_s15, %s582_s0 }
   0x7   :  { %p438_p2 = pnand %p436_p1, %p433_p0 }
   0x9   :  { %441 = shalt.err (!%p438_p2)
}
   0xa   :  { %s442_s20 = scalar_lea.vmem %s17_s10, 256  ;;  %p447_p4 = scmp.lt.s32.totalorder %s17_s10, %s17_s10 }
   0xb   :  { %p443_p3 = scmp.ne.s32.totalorder %s17_s10, %s442_s20  ;;  %p448_p5 = scmp.lt.s32.totalorder %s442_s20, %s442_s20 }
   0xd   :  { %p449_p6 = por %p448_p5, %p447_p4 }
   0xf   :  { %p450_p7 = pnand %p449_p6, %p443_p3 }
  0x11   :  { %453 = shalt.err (!%p450_p7)
}
  0x12   :  { %19 = dma.hbm_to_vmem [thread:$0]  %s582_s0, 256, %s17_s10, [#allocation3]  }
  0x13   :  { %s454_s25 = scalar_lea.hbm %s583_s1, 640 }
  0x14   :  { %p455_p8 = scmp.ne.s32.totalorder %s583_s1, %s454_s25  ;;  %p458_p9 = scmp.lt.u32.totalorder %s454_s25, %s583_s1 }
  0x16   :  { %p460_p10 = pnand %p458_p9, %p455_p8 }
  0x18   :  { %463 = shalt.err (!%p460_p10)
}
  0x19   :  { %s464_s30 = scalar_lea.vmem %s528_s12, 640  ;;  %p469_p12 = scmp.lt.s32.totalorder %s528_s12, %s528_s12 }
  0x1a   :  { %p465_p11 = scmp.ne.s32.totalorder %s528_s12, %s464_s30  ;;  %p470_p13 = scmp.lt.s32.totalorder %s464_s30, %s464_s30 }
  0x1c   :  { %p471_p0 = por %p470_p13, %p469_p12 }
  0x1e   :  { %p472_p1 = pnand %p471_p0, %p465_p11 }
  0x20   :  { %475 = shalt.err (!%p472_p1)
}
  0x21   :  { %s506_s0 = smov 128   ;;  %s507_s3 = smov 8  }
  0x22   :  { %31 = dma.hbm_to_vmem [thread:$0]  %s583_s1, 640, %s528_s12, [#allocation6], %s506_s0, %s506_s0, %s507_s3  }
  0x23   :  { %498 = dma.done.wait [#allocation3], 256  }
  0x24   :  { %499 = vsyncadd [#allocation3], 4294967040 }
  0x25   :  { %500 = dma.done.wait [#allocation6], 640  }
  0x26   :  { %501 = vsyncadd [#allocation6], 4294966656  ;;  %v44_v0 = vlaneseq  ;;  %v508_v1 = vmov 1983009808   ;;  %v38_v6 = vld [vmem:[#allocation2] sm:$0xff]  ;;  %vm51_vm0 = vcmask 1041408  }
  0x27   :  { %v42_v2 = vunpack.c.l.s4 %v508_v1  ;;  %v39_v7 = vld [vmem:[#allocation2 + $0x8] sm:$0xff]  ;;  %v59_v9 = vcombine.high %v38_v6, %v38_v6  ;;  %v116_v30 = vld [vmem:[#allocation5] sm:$0xf]  ;;  %vm132_vm1 = vcmask 1043456   ;;  %v509_v31 = vmov 0.0   ;;  %v117_v43 = vld [vmem:[#allocation5 + $0x4] sm:$0xff] }
  0x28   :  { %v45_v3 = vshrl.u32 %v44_v0, 7  ;;  %v93_v11 = vcombine.high %v39_v7, %v39_v7  ;;  %396 = vmatprep.subr.mxu0 %v509_v31  ;;  %vm510_vm2 = vmmov 0   ;;  %vm110_vm3 = vcmask 7168   ;;  %v118_v44 = vld [vmem:[#allocation5 + $0xc] sm:$0xff]  ;;  %v381_v47 = vld [vmem:[#allocation5 + $0x24] ss:$0 sm:$0xff] }
  0x29   :  { %v43_v4 = vunpack.c.0.s8 %v42_v2  ;;  %398 = vmatprep.mubr.msk.f32.mxu0 %vm510_vm2, %v509_v31  ;;  %397 = vmatpush3.msk.msra.mxu0 %vm132_vm1, %v116_v30  ;;  %vm112_vm4 = vcmask 15360   ;;  %vm114_vm5 = vcmask 23552   ;;  %vm128_vm6 = vcmask 31744   ;;  %v119_v52 = vld [vmem:[#allocation5 + $0x14] sm:$0xff]  ;;  %v120_v53 = vld [vmem:[#allocation5 + $0x1c] sm:$0xff]  ;;  %s512_s1 = smov [#allocation7]  }
  0x2a   :  { %405 = vmatprep.mubr.msk.f32.mxu1 %vm510_vm2, %v509_v31  ;;  %v416_v45 = vpack.c.bf16 %v118_v44, %v117_v43  ;;  %v511_v46 = vmov 0.0|0.0   ;;  %vm211_vm7 = vcmask 130048   ;;  %v419_v54 = vpack.c.bf16 %v120_v53, %v119_v52  ;;  %v384_v55 = vld [vmem:[#allocation5 + $0x25] ss:$0 sm:$0xff]  ;;  %v386_v60 = vld [vmem:[#allocation5 + $0x26] ss:$0 sm:$0xff] }
  0x2b   :  { %v46_v5 = vsub.s32 %v43_v4, %v45_v3  ;;  %415 = vmatprep.subr.bf16.mxu1 %v511_v46  ;;  %418 = vmatprep.subr.bf16.mxu0 %v511_v46  ;;  %s371_s6 = sshll.u32 %s512_s1, 4  ;;  %vm363_vm8 = vcmask 58368   ;;  %s372_s6 = int_to_ptr.vmem [resolvable:$true] %s371_s6 }
  0x2c   :  { %417 = vmatpush3.bf16.msra.mxu1 %v416_v45  ;;  %s476_s7 = scalar_lea.vmem %s372_s6, 32  ;;  %p481_p3 = scmp.lt.s32.totalorder %s372_s6, %s372_s6 }
  0x2d   :  { %v47_v8 = vrot.slane %v38_v6, %v46_v5  ;;  %v83_v10 = vrot.slane %v39_v7, %v46_v5  ;;  %v66_v16 = vrot.slane %v59_v9, %v46_v5  ;;  %v100_v17 = vrot.slane %v93_v11, %v46_v5  ;;  %p477_p2 = scmp.ne.s32.totalorder %s372_s6, %s476_s7  ;;  %p482_p4 = scmp.lt.s32.totalorder %s476_s7, %s476_s7 }
  0x2f   :  { %v48_v12 = vcombine.high %v47_v8, %v47_v8  ;;  %v52_v13 = vsel %vm51_vm0, %v47_v8, 0.0  ;;  %v84_v14 = vcombine.high %v83_v10, %v83_v10  ;;  %v87_v15 = vsel %vm51_vm0, %v83_v10, 0.0  ;;  %p483_p5 = por %p482_p4, %p481_p3 }
  0x30   :  { %v67_v22 = vcombine.high %v66_v16, %v66_v16  ;;  %v70_v23 = vsel %vm51_vm0, %v66_v16, 0.0  ;;  %v101_v24 = vcombine.high %v100_v17, %v100_v17  ;;  %v104_v25 = vsel %vm51_vm0, %v100_v17, 0.0 }
  0x31   :  { %v53_v18 = vsel %vm51_vm0, %v48_v12, 0.0  ;;  %v88_v19 = vsel %vm51_vm0, %v84_v14, 0.0  ;;  %p484_p6 = pnand %p483_p5, %p477_p2 }
  0x32   :  { %v54_v20 = vadd.f32 %v53_v18, %v52_v13  ;;  %v89_v21 = vadd.f32 %v88_v19, %v87_v15  ;;  %v71_v26 = vsel %vm51_vm0, %v67_v22, 0.0  ;;  %v105_v28 = vsel %vm51_vm0, %v101_v24, 0.0 }
  0x33   :  { %v72_v27 = vadd.f32 %v71_v26, %v70_v23  ;;  %v106_v29 = vadd.f32 %v105_v28, %v104_v25 }
  0x34   :  { %55 = vadd.xlane.f32.xlu0 %v54_v20  ;;  %90 = vadd.xlane.f32.xlu1 %v89_v21 }
  0x38   :  { %73 = vadd.xlane.f32.xlu0 %v72_v27  ;;  %107 = vadd.xlane.f32.xlu1 %v106_v29 }
  0xc1   :  { %v56_v32 = vpop.xlane.xlu0 %55  ;;  %v91_v33 = vpop.xlane.xlu1 %90 }
  0xc2   :  { %v58_v36 = vmul.f32 0.00390625, %v56_v32  ;;  %v92_v39 = vmul.f32 0.00390625, %v91_v33 }
  0xc5   :  { %v74_v34 = vpop.xlane.xlu0 %73  ;;  %v108_v35 = vpop.xlane.xlu1 %107 }
  0xc6   :  { %v75_v37 = vmul.f32 0.00390625, %v74_v34  ;;  %v109_v38 = vmul.f32 0.00390625, %v108_v35 }
  0xc8   :  { %v111_v40 = vsel %vm110_vm3, %v58_v36, %v75_v37 }
  0xc9   :  { %v113_v41 = vsel %vm112_vm4, %v111_v40, %v92_v39 }
  0xca   :  { %v115_v42 = vsel %vm114_vm5, %v113_v41, %v109_v38 }
  0xcb   :  { %399 = vmatmul.mubr.msk.f32.vlgmr.msra.gmra.mrb[0].mxu0 %vm128_vm6, %v115_v42 }
  0xcc   :  { %412 = vmatprep.mubr.msk.f32.mxu0 %vm510_vm2, %v509_v31  ;;  %420 = vmatpush3.bf16.msra.mxu0 %v419_v54 }
 0x19e   :  { %v202_v48 = vpop.f32.mrb[0].mxu0 }
 0x19f   :  { %v203_v49 = vadd.f32 %v381_v47, %v202_v48  ;;  %v400_v50 = vpop.f32.mrb[1].mxu0 }
 0x1a1   :  { %v206_v51 = vmax.f32 %v203_v49, 0.0 }
 0x1a3   :  { %406 = vmatmul.mubr.msk.f32.vlgmr.msra.gmra.mrb[0].mxu1 %vm211_vm7, %v206_v51 }
 0x276   :  { %v281_v56 = vpop.f32.mrb[0].mxu1 }
 0x277   :  { %v282_v57 = vadd.f32 %v384_v55, %v281_v56  ;;  %v407_v58 = vpop.f32.mrb[1].mxu1 }
 0x279   :  { %v285_v59 = vmax.f32 %v282_v57, 0.0 }
 0x27b   :  { %413 = vmatmul.mubr.msk.f32.vlgmr.msra.gmra.mrb[2].mxu0 %vm211_vm7, %v285_v59 }
 0x34e   :  { %v359_v61 = vpop.f32.mrb[2].mxu0 }
 0x34f   :  { %v360_v62 = vadd.f32 %v386_v60, %v359_v61  ;;  %v414_v63 = vpop.f32.mrb[3].mxu0 }
 0x351   :  { %364 = vst.msk [vmem:[#allocation7] sm:$0x3] %vm363_vm8, %v360_v62 }
 0x352   :  { %487 = shalt.err (!%p484_p6)
}
 0x353   :  { %s488_s10 = scalar_lea.hbm %s584_s2, 32 }
 0x354   :  { %p489_p7 = scmp.ne.s32.totalorder %s584_s2, %s488_s10  ;;  %p492_p8 = scmp.lt.u32.totalorder %s488_s10, %s584_s2 }
 0x356   :  { %p494_p9 = pnand %p492_p8, %p489_p7 }
 0x358   :  { %497 = shalt.err (!%p494_p9)
}
 0x359   :  { %374 = dma.vmem_to_hbm [thread:$0]  %s372_s6, 32, %s584_s2, [#allocation4]  }
 0x35a   :  { %502 = dma.done.wait [#allocation4], 32  }
 0x35b   :  { %503 = vsyncadd [#allocation4], 4294967264 }
 0x35c   :  { %378 = vsyncpa [#allocation3], 1 }
 0x35d   :  { %379 = vsyncpa [#allocation6], 1 }
 0x35e   :  { %380 = vsyncpa [#allocation4], 1 }

</bundles_post_ra>
